<compile_context>
chip_gen: v5e
topology: v5e:2x2
jax: 0.10.0
libtpu: 0.0.40
codegen_flags: <defaults>
</compile_context>

<pallas_src>
import jax
import jax.numpy as jnp
import numpy as np
from jax import lax
from jax.experimental import pallas as pl
from jax.experimental.pallas import tpu as pltpu

NUM_LEVELS = 201
N_GRAM_SIZE = 4
LOW, HIGH = -100.0, 100.0


def make_encoder_kernel(BT, T, C, L, CLp, D, N):
    rows = BT * T
    W = T - N + 1

    def kernel(x_ref, bound_ref, out_ref):
        # x_ref     : VMEM (BT, T, C)  f32  -- tile of batch rows of raw sensor values
        # bound_ref : VMEM (CLp, D)    bf16 -- level (x) channel bound codebook (0-padded)
        # out_ref   : VMEM (BT, D)     f32  -- encoded class hypervectors
        x = x_ref[...].reshape(rows, C)                         # flat time-major rows

        # Level-embedding quantization (value -> level index), fused in-kernel.
        idx = jnp.clip(
            jnp.round((x - LOW) / (HIGH - LOW) * (L - 1)), 0.0, L - 1.0
        ).astype(jnp.int32)                                     # (rows, C)

        # Multi-hot (rows, CLp): row r has a 1 at column c*L + idx[r, c] for every c.
        # Channel column ranges are disjoint, so summation builds the multi-hot; the
        # zero-padded columns [C*L, CLp) can never match and stay 0.
        iota_cl = lax.broadcasted_iota(jnp.int32, (rows, CLp), 1)
        multihot = (iota_cl == idx[:, 0:1]).astype(jnp.bfloat16)  # c = 0 term
        for c in range(1, C):
            multihot = multihot + (
                iota_cl == (idx[:, c:c + 1] + c * L)
            ).astype(jnp.bfloat16)

        # bind + multiset over channels == one MXU matmul (bf16 in, f32 accumulate;
        # exact since every operand is 0/1 or +-1).
        samples = jnp.dot(
            multihot, bound_ref[...], preferred_element_type=jnp.float32
        )                                                       # (rows, D)

        # n-grams over time: lane rolls of the whole flat slab, per-row sliding-window
        # products, one sublane reduction.  Accumulator seeded from the first term.
        def shifted(sh):
            r = samples if sh == 0 else pltpu.roll(samples, shift=sh, axis=1)
            return r.reshape(BT, T, D)

        grams = shifted(N - 1)[:, 0:W, :]                       # i = 0 term
        for i in range(1, N):
            grams = grams * shifted(N - 1 - i)[:, i:i + W, :]
        gacc = jnp.sum(grams, axis=1)                           # (BT, D)

        out_ref[...] = jnp.where(gacc > 0.0, 1.0, -1.0)         # hard_quantize

    return kernel


def encoder_forward(x, level_table, channel_hv):
    B, T, C = x.shape
    L, D = level_table.shape
    N = N_GRAM_SIZE
    assert D % 128 == 0, "lane roll requires D to be a multiple of 128"
    assert T >= N
    # TODO(synk): for D not a multiple of 128 the circular n-gram roll would wrap
    # through lane padding and needs an explicit masked/halo roll.

    # Precompute the bound codebook: bound[c*L + l, :] = level[l, :] * chan[c, :].
    # Zero-pad the contraction dim to a lane multiple and cast to bf16 (+-1 exact)
    # so the multi-hot compares and MXU tiles are unmasked and the codebook DMA is
    # halved.  (CLp, D) bf16 at default sizes ~= 224 KiB -> VMEM-resident everywhere.
    CL = C * L
    CLp = ((CL + 127) // 128) * 128
    bound = (channel_hv[:, None, :] * level_table[None, :, :]).reshape(CL, D)
    if CLp != CL:
        bound = jnp.pad(bound, ((0, CLp - CL), (0, 0)))
    bound = bound.astype(jnp.bfloat16)

    # Tile the batch: each grid step feeds the MXU one (bt*T, CLp) slab and writes a
    # sublane-dense (bt, D) output block.  Pad B so the tile always divides it (padded
    # rows are computed on zeros and sliced off).  Batch tiling needs T % 8 == 0 so
    # the in-kernel reshapes stay tile-aligned; otherwise fall back to one row/step.
    bt = min(B, 16) if T % 8 == 0 else 1
    Bp = ((B + bt - 1) // bt) * bt
    xp = x if Bp == B else jnp.pad(x, ((0, Bp - B), (0, 0), (0, 0)))

    kernel = make_encoder_kernel(bt, T, C, L, CLp, D, N)
    out = pl.pallas_call(
        kernel,
        out_shape=jax.ShapeDtypeStruct((Bp, D), jnp.float32),
        grid=(Bp // bt,),
        in_specs=[
            pl.BlockSpec((bt, T, C), lambda b: (b, 0, 0)),      # batch tile of x
            pl.BlockSpec((CLp, D), lambda b: (0, 0)),           # resident codebook
        ],
        out_specs=pl.BlockSpec((bt, D), lambda b: (b, 0)),
        compiler_params=pltpu.CompilerParams(
            dimension_semantics=("parallel",),
        ),
    )(xp, bound)
    return out[:B] if Bp != B else out


def reference_forward(x, level_table, channel_hv):
    """Pure-JAX reference mirroring the PyTorch/torchhd forward exactly."""
    L, D = level_table.shape
    N = N_GRAM_SIZE
    idx = jnp.clip(
        jnp.round((x - LOW) / (HIGH - LOW) * (L - 1)), 0, L - 1
    ).astype(jnp.int32)
    signal = level_table[idx]                       # (B, T, C, D) level lookup
    samples = signal * channel_hv[None, None]       # bind with channel codebook
    samples = samples.sum(axis=-2)                  # multiset over channels -> (B, T, D)
    B, T, _ = samples.shape
    grams = jnp.ones((B, T - N + 1, D), jnp.float32)
    for i in range(N):
        seg = samples[:, i:i + (T - N + 1), :]
        grams = grams * jnp.roll(seg, shift=N - 1 - i, axis=-1)
    hv = grams.sum(axis=1)                          # multiset over n-grams
    return jnp.where(hv > 0.0, 1.0, -1.0)           # hard_quantize


def init_params(key, num_channels, out_features):
    """Deterministic synthetic codebooks (shapes from the module __init__).
    embeddings.Random -> random +-1 HVs; embeddings.Level -> interpolative level HVs."""
    k1, k2, k3 = jax.random.split(key, 3)
    channel_hv = jnp.where(
        jax.random.uniform(k1, (num_channels, out_features)) < 0.5, -1.0, 1.0
    ).astype(jnp.float32)
    base = jnp.where(jax.random.uniform(k2, (out_features,)) < 0.5, -1.0, 1.0)
    cut = jax.random.uniform(k3, (out_features,))
    frac = jnp.arange(NUM_LEVELS, dtype=jnp.float32)[:, None] / (NUM_LEVELS - 1)
    level_table = jnp.where(frac <= cut[None, :], base[None, :], -base[None, :])
    return level_table.astype(jnp.float32), channel_hv


if __name__ == "__main__":
    key = jax.random.PRNGKey(0)
    B, T, C, D = 2, 8, 4, 128          # batch, time steps, channels, HD dimension
    kx, kp = jax.random.split(key)
    x = jax.random.uniform(kx, (B, T, C), minval=-100.0, maxval=100.0,
                           dtype=jnp.float32)
    level_table, channel_hv = init_params(kp, C, D)

    out = encoder_forward(x, level_table, channel_hv)
    out = jax.block_until_ready(out)

    ref = reference_forward(x, level_table, channel_hv)
    if not np.array_equal(np.asarray(out), np.asarray(ref)):
        raise AssertionError("Pallas output does not match JAX reference")
    print("KERNEL_OK")
</pallas_src>

<mosaic_0001>
module attributes {stable_mosaic.version = 11 : i64} {
  func.func @kernel(%arg0: i32, %arg1: memref<2x8x4xf32, #tpu.memory_space<vmem>>, %arg2: memref<896x128xbf16, #tpu.memory_space<vmem>>, %arg3: memref<2x128xf32, #tpu.memory_space<vmem>>) attributes {dimension_semantics = [#tpu.dimension_semantics<parallel>], iteration_bounds = array<i64: 1>, scalar_prefetch = 0 : i64, scratch_operands = 0 : i64, tpu.core_type = #tpu.core_type<tc>, window_params = [{transform_indices = @transform_0, window_bounds = array<i64: 2, 8, 4>}, {pipeline_mode = #tpu.pipeline_mode<synchronous>, transform_indices = @transform_1, window_bounds = array<i64: 896, 128>}, {transform_indices = @transform_2, window_bounds = array<i64: 2, 128>}]} {
    %c0 = arith.constant 0 : index
    %c0_0 = arith.constant 0 : index
    %c0_1 = arith.constant 0 : index
    %0 = vector.load %arg1[%c0, %c0_0, %c0_1] : memref<2x8x4xf32, #tpu.memory_space<vmem>>, vector<2x8x4xf32>
    %1 = vector.shape_cast %0 : vector<2x8x4xf32> to vector<16x4xf32>
    %cst = arith.constant -1.000000e+02 : f32
    %2 = vector.broadcast %cst : f32 to vector<16x4xf32>
    %3 = arith.subf %1, %2 : vector<16x4xf32>
    %cst_2 = arith.constant 2.000000e+02 : f32
    %4 = vector.broadcast %cst_2 : f32 to vector<16x4xf32>
    %5 = arith.divf %3, %4 : vector<16x4xf32>
    %cst_3 = arith.constant 2.000000e+02 : f32
    %6 = vector.broadcast %cst_3 : f32 to vector<16x4xf32>
    %7 = arith.mulf %5, %6 : vector<16x4xf32>
    %8 = math.roundeven %7 : vector<16x4xf32>
    %cst_4 = arith.constant 0.000000e+00 : f32
    %cst_5 = arith.constant 2.000000e+02 : f32
    %9 = vector.broadcast %cst_4 : f32 to vector<16x4xf32>
    %10 = arith.maximumf %9, %8 : vector<16x4xf32>
    %11 = vector.broadcast %cst_5 : f32 to vector<16x4xf32>
    %12 = arith.minimumf %11, %10 : vector<16x4xf32>
    %13 = arith.fptosi %12 : vector<16x4xf32> to vector<16x4xi32>
    %14 = tpu.iota {dimensions = array<i32: 1>} : vector<16x896xi32>
    %15 = vector.extract_strided_slice %13 {offsets = [0, 0], sizes = [16, 1], strides = [1, 1]} : vector<16x4xi32> to vector<16x1xi32>
    %16 = vector.broadcast %15 : vector<16x1xi32> to vector<16x896xi32>
    %17 = arith.cmpi eq, %14, %16 : vector<16x896xi32>
    %18 = arith.extui %17 : vector<16x896xi1> to vector<16x896xi32>
    %19 = arith.sitofp %18 : vector<16x896xi32> to vector<16x896xf32>
    %20 = arith.truncf %19 : vector<16x896xf32> to vector<16x896xbf16>
    %21 = vector.extract_strided_slice %13 {offsets = [0, 1], sizes = [16, 1], strides = [1, 1]} : vector<16x4xi32> to vector<16x1xi32>
    %c201_i32 = arith.constant 201 : i32
    %22 = vector.broadcast %c201_i32 : i32 to vector<16x1xi32>
    %23 = arith.addi %21, %22 : vector<16x1xi32>
    %24 = vector.broadcast %23 : vector<16x1xi32> to vector<16x896xi32>
    %25 = arith.cmpi eq, %14, %24 : vector<16x896xi32>
    %26 = arith.extui %25 : vector<16x896xi1> to vector<16x896xi32>
    %27 = arith.sitofp %26 : vector<16x896xi32> to vector<16x896xf32>
    %28 = arith.truncf %27 : vector<16x896xf32> to vector<16x896xbf16>
    %29 = arith.addf %20, %28 : vector<16x896xbf16>
    %30 = vector.extract_strided_slice %13 {offsets = [0, 2], sizes = [16, 1], strides = [1, 1]} : vector<16x4xi32> to vector<16x1xi32>
    %c402_i32 = arith.constant 402 : i32
    %31 = vector.broadcast %c402_i32 : i32 to vector<16x1xi32>
    %32 = arith.addi %30, %31 : vector<16x1xi32>
    %33 = vector.broadcast %32 : vector<16x1xi32> to vector<16x896xi32>
    %34 = arith.cmpi eq, %14, %33 : vector<16x896xi32>
    %35 = arith.extui %34 : vector<16x896xi1> to vector<16x896xi32>
    %36 = arith.sitofp %35 : vector<16x896xi32> to vector<16x896xf32>
    %37 = arith.truncf %36 : vector<16x896xf32> to vector<16x896xbf16>
    %38 = arith.addf %29, %37 : vector<16x896xbf16>
    %39 = vector.extract_strided_slice %13 {offsets = [0, 3], sizes = [16, 1], strides = [1, 1]} : vector<16x4xi32> to vector<16x1xi32>
    %c603_i32 = arith.constant 603 : i32
    %40 = vector.broadcast %c603_i32 : i32 to vector<16x1xi32>
    %41 = arith.addi %39, %40 : vector<16x1xi32>
    %42 = vector.broadcast %41 : vector<16x1xi32> to vector<16x896xi32>
    %43 = arith.cmpi eq, %14, %42 : vector<16x896xi32>
    %44 = arith.extui %43 : vector<16x896xi1> to vector<16x896xi32>
    %45 = arith.sitofp %44 : vector<16x896xi32> to vector<16x896xf32>
    %46 = arith.truncf %45 : vector<16x896xf32> to vector<16x896xbf16>
    %47 = arith.addf %38, %46 : vector<16x896xbf16>
    %c0_6 = arith.constant 0 : index
    %c0_7 = arith.constant 0 : index
    %48 = vector.load %arg2[%c0_6, %c0_7] : memref<896x128xbf16, #tpu.memory_space<vmem>>, vector<896x128xbf16>
    %cst_8 = arith.constant dense<0.000000e+00> : vector<16x128xf32>
    %49 = tpu.matmul %47, %48, %cst_8 {dimension_numbers = #tpu.dot_dimension_numbers<[1], [0], [0], [1], [0, 0, 1, 1], [], []>} : vector<16x896xbf16>, vector<896x128xbf16>, vector<16x128xf32> -> vector<16x128xf32>
    %c3_i32 = arith.constant 3 : i32
    %50 = tpu.dynamic_rotate %49 by %c3_i32 dim 1 : vector<16x128xf32>, i32 -> vector<16x128xf32>
    %51 = vector.shape_cast %50 : vector<16x128xf32> to vector<2x8x128xf32>
    %52 = vector.extract_strided_slice %51 {offsets = [0, 0, 0], sizes = [2, 5, 128], strides = [1, 1, 1]} : vector<2x8x128xf32> to vector<2x5x128xf32>
    %c2_i32 = arith.constant 2 : i32
    %53 = tpu.dynamic_rotate %49 by %c2_i32 dim 1 : vector<16x128xf32>, i32 -> vector<16x128xf32>
    %54 = vector.shape_cast %53 : vector<16x128xf32> to vector<2x8x128xf32>
    %55 = vector.extract_strided_slice %54 {offsets = [0, 1, 0], sizes = [2, 5, 128], strides = [1, 1, 1]} : vector<2x8x128xf32> to vector<2x5x128xf32>
    %56 = arith.mulf %52, %55 : vector<2x5x128xf32>
    %c1_i32 = arith.constant 1 : i32
    %57 = tpu.dynamic_rotate %49 by %c1_i32 dim 1 : vector<16x128xf32>, i32 -> vector<16x128xf32>
    %58 = vector.shape_cast %57 : vector<16x128xf32> to vector<2x8x128xf32>
    %59 = vector.extract_strided_slice %58 {offsets = [0, 2, 0], sizes = [2, 5, 128], strides = [1, 1, 1]} : vector<2x8x128xf32> to vector<2x5x128xf32>
    %60 = arith.mulf %56, %59 : vector<2x5x128xf32>
    %61 = vector.shape_cast %49 : vector<16x128xf32> to vector<2x8x128xf32>
    %62 = vector.extract_strided_slice %61 {offsets = [0, 3, 0], sizes = [2, 5, 128], strides = [1, 1, 1]} : vector<2x8x128xf32> to vector<2x5x128xf32>
    %63 = arith.mulf %60, %62 : vector<2x5x128xf32>
    %cst_9 = arith.constant dense<0.000000e+00> : vector<2x128xf32>
    %64 = vector.multi_reduction <add>, %63, %cst_9 [1] : vector<2x5x128xf32> to vector<2x128xf32>
    %cst_10 = arith.constant 0.000000e+00 : f32
    %65 = vector.broadcast %cst_10 : f32 to vector<2x128xf32>
    %66 = arith.cmpf ogt, %64, %65 : vector<2x128xf32>
    %cst_11 = arith.constant 1.000000e+00 : f32
    %cst_12 = arith.constant -1.000000e+00 : f32
    %67 = vector.broadcast %cst_11 : f32 to vector<2x128xf32>
    %68 = vector.broadcast %cst_12 : f32 to vector<2x128xf32>
    %69 = arith.select %66, %67, %68 : vector<2x128xi1>, vector<2x128xf32>
    %c0_13 = arith.constant 0 : index
    %c0_14 = arith.constant 0 : index
    %70 = vector.load %arg3[%c0_13, %c0_14] : memref<2x128xf32, #tpu.memory_space<vmem>>, vector<2x128xf32>
    tpu.vector_store %arg3[%c0_13, %c0_14], %69 {strides = array<i32>} : memref<2x128xf32, #tpu.memory_space<vmem>>, vector<2x128xf32>,
    return
  }
  func.func @transform_0(%arg0: i32) -> (i32, i32, i32) {
    %c0_i32 = arith.constant 0 : i32
    %c0_i32_0 = arith.constant 0 : i32
    %c0_i32_1 = arith.constant 0 : i32
    return %arg0, %c0_i32, %c0_i32_0 : i32, i32, i32
  }
  func.func @transform_1(%arg0: i32) -> (i32, i32) {
    %c0_i32 = arith.constant 0 : i32
    %c0_i32_0 = arith.constant 0 : i32
    %c0_i32_1 = arith.constant 0 : i32
    return %c0_i32, %c0_i32_0 : i32, i32
  }
  func.func @transform_2(%arg0: i32) -> (i32, i32) {
    %c0_i32 = arith.constant 0 : i32
    %c0_i32_0 = arith.constant 0 : i32
    return %arg0, %c0_i32 : i32, i32
  }
}

</mosaic_0001>

<bundles_post_ra>
// kernel: tpu_custom_call.1
= control target key start
LH: loop header
LB: loop body
LE: loop exit
PB: predicated region body
PF: predicated region fallthrough
CT: control target
= control target key end

     0   :  { %7 = vsyncpa [#allocation3], 0  ;;  %s1812_s0 = inlined_call_operand.vmem [shape: f32[2,8,4], index: 0, kind: input, shape index: {}]   ;;  %s1813_s1 = inlined_call_operand.hbm [shape: bf16[896,128], index: 1, kind: input, shape index: {}]   ;;  %s1814_s2 = inlined_call_operand.hbm [shape: f32[2,128], index: 2, kind: output, shape index: {}]  }
   0x1   :  { %8 = vsyncpa [#allocation4], 0  ;;  %s15_s11 = sshll.u32 %s1813_s1, 4  ;;  %s1485_s12 = smov [#allocation2]   ;;  %s16_s11 = int_to_ptr.hbm [resolvable:$true] %s15_s11 }
   0x2   :  { %s17_s13 = sshll.u32 %s1485_s12, 4  ;;  %s1486_s14 = smov 64   ;;  %s18_s13 = int_to_ptr.vmem [resolvable:$true] %s17_s13 }
   0x3   :  { %s1487_s15 = smov 4  }
   0x4   :  { %23 = dma.hbm_to_vmem [thread:$0]  %s16_s11, 7168, %s18_s13, [#allocation3], %s1486_s14, %s1486_s14, %s1487_s15  }
   0x5   :  { %1481 = dma.done.wait [#allocation3], 7168  }
   0x6   :  { %1482 = vsyncadd [#allocation3], 4294960128  ;;  %v1488_v0 = vmov 0   ;;  %v1489_v1 = vmov 200.0   ;;  %v1490_v2 = vmov 1   ;;  %v28_v5 = vld [vmem:[%s1812_s0] sm:$0xff] }
   0x7   :  { %1426 = vset.pattern.permute.xlu0 %v1488_v0  ;;  %1431 = vrcp.f32 %v1489_v1  ;;  %1427 = vset.pattern.permute.xlu1 %v1490_v2  ;;  %v29_v7 = vld [vmem:[%s1812_s0 + $0x8] sm:$0xff]  ;;  %v1062_v9 = vadd.f32 100.0, %v28_v5  ;;  %v1357_v12 = vld [vmem:[#allocation2 + $0x38] sm:$0xff]  ;;  %v1491_v15 = vmov 2   ;;  %v1356_v17 = vld [vmem:[#allocation2 + $0x30] sm:$0xff]  ;;  %v1492_v43 = vmov 3  }
   0x8   :  { %v1063_v10 = vadd.f32 100.0, %v29_v7  ;;  %v1365_v13 = vld [vmem:[#allocation2 + $0x78] sm:$0xff]  ;;  %1428 = vset.pattern.permute.xlu2 %v1491_v15  ;;  %886 = vmatpush.bf16.msra.mxu0 %v1357_v12  ;;  %v1364_v18 = vld [vmem:[#allocation2 + $0x70] sm:$0xff]  ;;  %v1355_v25 = vld [vmem:[#allocation2 + $0x28] sm:$0xff]  ;;  %v51_v0 = vlaneseq  ;;  %s1494_s0 = smov 2   ;;  %s1495_s19 = smov 3  }
   0x9   :  { %v1373_v14 = vld [vmem:[#allocation2 + $0xb8] sm:$0xff]  ;;  %900 = vmatpush.bf16.msra.mxu1 %v1365_v13  ;;  %v1372_v21 = vld [vmem:[#allocation2 + $0xb0] sm:$0xff]  ;;  %v1363_v26 = vld [vmem:[#allocation2 + $0x68] sm:$0xff]  ;;  %s1496_s20 = smov 1   ;;  %s1497_s21 = smov [#allocation5]  }
   0xa   :  { %914 = vmatpush.bf16.msra.mxu2 %v1373_v14  ;;  %v1381_v22 = vld [vmem:[#allocation2 + $0xf8] sm:$0xff]  ;;  %v1371_v29 = vld [vmem:[#allocation2 + $0xa8] sm:$0xff]  ;;  %v1354_v31 = vld [vmem:[#allocation2 + $0x20] sm:$0xff]  ;;  %s1050_s22 = sshll.u32 %s1497_s21, 4  ;;  %s1052_s25 = sshll.u32 %s1814_s2, 4  ;;  %s1051_s22 = int_to_ptr.vmem [resolvable:$true] %s1050_s22  ;;  %s1053_s25 = int_to_ptr.hbm [resolvable:$true] %s1052_s25 }
   0xb   :  { %928 = vmatpush.bf16.msra.mxu3 %v1381_v22  ;;  %v1362_v32 = vld [vmem:[#allocation2 + $0x60] sm:$0xff]  ;;  %v1353_v44 = vld [vmem:[#allocation2 + $0x18] sm:$0xff]  ;;  %v1380_v47 = vld [vmem:[#allocation2 + $0xf0] sm:$0xff] }
   0xc   :  { %887 = vmatpush.bf16.msra.mxu0 %v1356_v17  ;;  %v1370_v35 = vld [vmem:[#allocation2 + $0xa0] sm:$0xff]  ;;  %v1361_v45 = vld [vmem:[#allocation2 + $0x58] sm:$0xff]  ;;  %v1352_v48 = vld [vmem:[#allocation2 + $0x10] sm:$0xff] }
   0xd   :  { %v1432_v3 = vpop.eup %1431  ;;  %901 = vmatpush.bf16.msra.mxu1 %v1364_v18  ;;  %v1369_v46 = vld [vmem:[#allocation2 + $0x98] sm:$0xff]  ;;  %v1360_v49 = vld [vmem:[#allocation2 + $0x50] sm:$0xff]  ;;  %v1379_v51 = vld [vmem:[#allocation2 + $0xe8] sm:$0xff] }
   0xe   :  { %v33_v4 = vmul.f32 200.0, %v1432_v3  ;;  %vm37_vm0 = vweird.f32 %v1432_v3  ;;  %915 = vmatpush.bf16.msra.mxu2 %v1372_v21  ;;  %v1368_v50 = vld [vmem:[#allocation2 + $0x90] sm:$0xff]  ;;  %v1351_v52 = vld [vmem:[#allocation2 + $0x8] sm:$0xff]  ;;  %v1378_v55 = vld [vmem:[#allocation2 + $0xe0] sm:$0xff] }
   0xf   :  { %929 = vmatpush.bf16.msra.mxu3 %v1380_v47  ;;  %v1359_v53 = vld [vmem:[#allocation2 + $0x48] sm:$0xff]  ;;  %v1350_v56 = vld [vmem:[#allocation2] sm:$0xff]  ;;  %v1377_v59 = vld [vmem:[#allocation2 + $0xd8] sm:$0xff] }
  0x10   :  { %v34_v6 = vsub.f32 1.0, %v33_v4  ;;  %888 = vmatpush.bf16.msra.mxu0 %v1355_v25  ;;  %v1367_v54 = vld [vmem:[#allocation2 + $0x88] sm:$0xff]  ;;  %v1358_v57 = vld [vmem:[#allocation2 + $0x40] sm:$0xff]  ;;  %v1389_v60 = vld [vmem:[#allocation2 + $0x138] sm:$0xff] }
  0x11   :  { %902 = vmatpush.bf16.msra.mxu1 %v1363_v26  ;;  %v1366_v58 = vld [vmem:[#allocation2 + $0x80] sm:$0xff]  ;;  %v1397_v61 = vld [vmem:[#allocation2 + $0x178] sm:$0xff]  ;;  %v1376_v1 = vld [vmem:[#allocation2 + $0xd0] sm:$0xff] }
  0x12   :  { %v35_v8 = vmul.f32 %v1432_v3, %v34_v6  ;;  %916 = vmatpush.bf16.msra.mxu2 %v1371_v29  ;;  %v1405_v63 = vld [vmem:[#allocation2 + $0x1b8] sm:$0xff]  ;;  %v1388_v2 = vld [vmem:[#allocation2 + $0x130] sm:$0xff]  ;;  %v1375_v5 = vld [vmem:[#allocation2 + $0xc8] sm:$0xff] }
  0x13   :  { %930 = vmatpush.bf16.msra.mxu3 %v1379_v51  ;;  %v1404_v4 = vld [vmem:[#allocation2 + $0x1b0] sm:$0xff]  ;;  %v1387_v6 = vld [vmem:[#allocation2 + $0x128] sm:$0xff]  ;;  %v1386_v12 = vld [vmem:[#allocation2 + $0x120] sm:$0xff] }
  0x14   :  { %v36_v11 = vadd.f32 %v1432_v3, %v35_v8  ;;  %889 = vmatpush.bf16.msra.mxu0 %v1354_v31  ;;  %v1395_v7 = vld [vmem:[#allocation2 + $0x168] sm:$0xff]  ;;  %v1525_v8 = vand.u32 127, %v51_v0  ;;  %v1394_v13 = vld [vmem:[#allocation2 + $0x160] sm:$0xff]  ;;  %v1384_v47 = vld [vmem:[#allocation2 + $0x110] sm:$0xff] }
  0x15   :  { %903 = vmatpush.bf16.msra.mxu1 %v1362_v32  ;;  %v1402_v17 = vld [vmem:[#allocation2 + $0x1a0] sm:$0xff]  ;;  %v1383_v0 = vld [vmem:[#allocation2 + $0x108] sm:$0xff] }
  0x16   :  { %v38_v16 = vsel %vm37_vm0, %v1432_v3, %v36_v11  ;;  %917 = vmatpush.bf16.msra.mxu2 %v1370_v35  ;;  %v1396_v3 = vld [vmem:[#allocation2 + $0x170] sm:$0xff]  ;;  %v1530_v14 = vadd.s32 128, %v1525_v8  ;;  %v1533_v15 = vadd.s32 256, %v1525_v8  ;;  %v1541_v18 = vadd.s32 512, %v1525_v8 }
  0x17   :  { %v39_v19 = vmul.f32 %v1062_v9, %v38_v16  ;;  %v40_v20 = vmul.f32 %v1063_v10, %v38_v16  ;;  %931 = vmatpush.bf16.msra.mxu3 %v1378_v55  ;;  %v1403_v9 = vld [vmem:[#allocation2 + $0x1a8] sm:$0xff]  ;;  %v1374_v10 = vld [vmem:[#allocation2 + $0xc0] sm:$0xff]  ;;  %v1536_v16 = vadd.s32 384, %v1525_v8  ;;  %v1605_v29 = vadd.s32 768, %v1525_v8 }
  0x18   :  { %890 = vmatpush.bf16.msra.mxu0 %v1353_v44 }
  0x19   :  { %v41_v23 = vmul.f32 200.0, %v39_v19  ;;  %v42_v24 = vmul.f32 200.0, %v40_v20  ;;  %904 = vmatpush.bf16.msra.mxu1 %v1361_v45  ;;  %v1544_v19 = vadd.s32 640, %v1525_v8  ;;  %v1493_v20 = vmov 0.0  }
  0x1a   :  { %918 = vmatpush.bf16.msra.mxu2 %v1369_v46 }
  0x1b   :  { %v1064_v27 = vmax.f32 %v41_v23, 0.0  ;;  %v1067_v28 = vmax.f32 %v42_v24, 0.0  ;;  %932 = vmatpush.bf16.msra.mxu3 %v1377_v59 }
  0x1c   :  { %891 = vmatpush.bf16.msra.mxu0 %v1352_v48 }
  0x1d   :  { %v1065_v30 = vmin.f32 %v1064_v27, 200.0  ;;  %v1068_v34 = vmin.f32 %v1067_v28, 200.0  ;;  %905 = vmatpush.bf16.msra.mxu1 %v1360_v49 }
  0x1e   :  { %919 = vmatpush.bf16.msra.mxu2 %v1368_v50 }
  0x1f   :  { %v1408_v33 = vcvt.f32.s32 %v1065_v30  ;;  %v1411_v38 = vcvt.f32.s32 %v1068_v34  ;;  %933 = vmatpush.bf16.msra.mxu3 %v1376_v1 }
  0x20   :  { %892 = vmatpush.bf16.msra.mxu0 %v1351_v52  ;;  %v1392_v52 = vld [vmem:[#allocation2 + $0x150] sm:$0xff] }
  0x21   :  { %60 = vperm.xlu0 %1426, %v1408_v33   ;;  %v115_v36 = vadd.s32 201, %v1408_v33  ;;  %v223_v37 = vadd.s32 402, %v1408_v33  ;;  %v116_v39 = vadd.s32 201, %v1411_v38  ;;  %v224_v40 = vadd.s32 402, %v1411_v38  ;;  %906 = vmatpush.bf16.msra.mxu1 %v1359_v53  ;;  %v1400_v53 = vld [vmem:[#allocation2 + $0x190] sm:$0xff] }
  0x22   :  { %v331_v41 = vadd.s32 603, %v1408_v33  ;;  %v332_v42 = vadd.s32 603, %v1411_v38  ;;  %920 = vmatpush.bf16.msra.mxu2 %v1367_v54 }
  0x23   :  { %118 = vperm.xlu1 %1427, %v115_v36   ;;  %226 = vperm.xlu2 %1428, %v223_v37  }
  0x24   :  { %893 = vmatpush.bf16.msra.mxu0 %v1350_v56  ;;  %934 = vmatpush.bf16.msra.mxu3 %v1375_v5 }
  0x25   :  { %907 = vmatpush.bf16.msra.mxu1 %v1358_v57 }
  0x26   :  { %921 = vmatpush.bf16.msra.mxu2 %v1366_v58 }
  0x28   :  { %942 = vmatpush.bf16.msrb.mxu0 %v1389_v60  ;;  %935 = vmatpush.bf16.msra.mxu3 %v1374_v10 }
  0x29   :  { %63 = vperm.xlu0 %1426, %v1411_v38   ;;  %956 = vmatpush.bf16.msrb.mxu1 %v1397_v61 }
  0x2a   :  { %970 = vmatpush.bf16.msrb.mxu2 %v1405_v63 }
  0x2b   :  { %121 = vperm.xlu1 %1427, %v116_v39   ;;  %229 = vperm.xlu2 %1428, %v224_v40   ;;  %v1385_v40 = vld [vmem:[#allocation2 + $0x118] sm:$0xff] }
  0x2c   :  { %943 = vmatpush.bf16.msrb.mxu0 %v1388_v2 }
  0x2d   :  { %957 = vmatpush.bf16.msrb.mxu1 %v1396_v3 }
  0x2e   :  { %971 = vmatpush.bf16.msrb.mxu2 %v1404_v4  ;;  %v1391_v4 = vld [vmem:[#allocation2 + $0x148] sm:$0xff] }
  0x30   :  { %944 = vmatpush.bf16.msrb.mxu0 %v1387_v6 }
  0x31   :  { %1429 = vset.pattern.permute.xlu0 %v1492_v43  ;;  %958 = vmatpush.bf16.msrb.mxu1 %v1395_v7  ;;  %v1399_v7 = vld [vmem:[#allocation2 + $0x188] sm:$0xff] }
  0x32   :  { %334 = vperm.xlu0 %1429, %v331_v41   ;;  %972 = vmatpush.bf16.msrb.mxu2 %v1403_v9  ;;  %v1393_v41 = vld [vmem:[#allocation2 + $0x158] sm:$0xff] }
  0x33   :  { %1430 = vset.pattern.permute.xlu1 %v1492_v43 }
  0x34   :  { %337 = vperm.xlu1 %1430, %v332_v42   ;;  %945 = vmatpush.bf16.msrb.mxu0 %v1386_v12  ;;  %v1401_v42 = vld [vmem:[#allocation2 + $0x198] sm:$0xff] }
  0x35   :  { %959 = vmatpush.bf16.msrb.mxu1 %v1394_v13 }
  0x36   :  { %973 = vmatpush.bf16.msrb.mxu2 %v1402_v17  ;;  %v1382_v17 = vld [vmem:[#allocation2 + $0x100] sm:$0xff] }
  0x38   :  { %946 = vmatpush.bf16.msrb.mxu0 %v1385_v40  ;;  %v1390_v40 = vld [vmem:[#allocation2 + $0x140] sm:$0xff] }
  0x39   :  { %960 = vmatpush.bf16.msrb.mxu1 %v1393_v41 }
  0x3a   :  { %974 = vmatpush.bf16.msrb.mxu2 %v1401_v42 }
  0x3c   :  { %947 = vmatpush.bf16.msrb.mxu0 %v1384_v47 }
  0x3d   :  { %961 = vmatpush.bf16.msrb.mxu1 %v1392_v52 }
  0x3e   :  { %975 = vmatpush.bf16.msrb.mxu2 %v1400_v53 }
  0x40   :  { %948 = vmatpush.bf16.msrb.mxu0 %v1383_v0 }
  0x41   :  { %962 = vmatpush.bf16.msrb.mxu1 %v1391_v4 }
  0x42   :  { %976 = vmatpush.bf16.msrb.mxu2 %v1399_v7 }
  0x44   :  { %949 = vmatpush.bf16.msrb.mxu0 %v1382_v17 }
  0x45   :  { %963 = vmatpush.bf16.msrb.mxu1 %v1390_v40 }
  0x7d   :  { %v1523_v62 = vpop.permute.xlu2 %226 }
  0x7e   :  { %vm231_vm1 = vcmp.eq.s32.totalorder %v1525_v8, %v1523_v62  ;;  %vm232_vm2 = vcmp.eq.s32.totalorder %v1530_v14, %v1523_v62  ;;  %vm233_vm4 = vcmp.eq.s32.totalorder %v1533_v15, %v1523_v62  ;;  %vm234_vm5 = vcmp.eq.s32.totalorder %v1536_v16, %v1523_v62 }
  0x7f   :  { %v1557_v21 = vsel %vm231_vm1, 1.0, %v1493_v20  ;;  %vm235_vm9 = vcmp.eq.s32.totalorder %v1541_v18, %v1523_v62  ;;  %vm236_vm10 = vcmp.eq.s32.totalorder %v1544_v19, %v1523_v62  ;;  %v1575_v22 = vsel %vm232_vm2, 1.0, %v1493_v20 }
  0x80   :  { %v1587_v24 = vsel %vm233_vm4, 1.0, %v1493_v20  ;;  %v1593_v25 = vsel %vm234_vm5, 1.0, %v1493_v20  ;;  %v1610_v31 = vsel %vm235_vm9, 1.0, %v1493_v20  ;;  %v1613_v32 = vsel %vm236_vm10, 1.0, %v1493_v20 }
  0x85   :  { %v1527_v11 = vpop.permute.xlu2 %229 }
  0x86   :  { %vm238_vm3 = vcmp.eq.s32.totalorder %v1525_v8, %v1527_v11  ;;  %vm239_vm6 = vcmp.eq.s32.totalorder %v1530_v14, %v1527_v11  ;;  %vm240_vm7 = vcmp.eq.s32.totalorder %v1533_v15, %v1527_v11  ;;  %vm241_vm8 = vcmp.eq.s32.totalorder %v1536_v16, %v1527_v11 }
  0x87   :  { %vm242_vm11 = vcmp.eq.s32.totalorder %v1541_v18, %v1527_v11  ;;  %vm243_vm12 = vcmp.eq.s32.totalorder %v1544_v19, %v1527_v11  ;;  %v1581_v23 = vsel %vm238_vm3, 1.0, %v1493_v20  ;;  %v1596_v26 = vsel %vm239_vm6, 1.0, %v1493_v20 }
  0x88   :  { %v1599_v27 = vsel %vm240_vm7, 1.0, %v1493_v20  ;;  %v1602_v28 = vsel %vm241_vm8, 1.0, %v1493_v20  ;;  %v1616_v33 = vsel %vm242_vm11, 1.0, %v1493_v20  ;;  %v1619_v34 = vsel %vm243_vm12, 1.0, %v1493_v20 }
  0x93   :  { %v1607_v30 = vpop.permute.xlu0 %60 }
  0x94   :  { %vm65_vm13 = vcmp.eq.s32.totalorder %v1525_v8, %v1607_v30  ;;  %vm66_vm14 = vcmp.eq.s32.totalorder %v1530_v14, %v1607_v30  ;;  %vm67_vm15 = vcmp.eq.s32.totalorder %v1533_v15, %v1607_v30  ;;  %vm68_vm0 = vcmp.eq.s32.totalorder %v1536_v16, %v1607_v30 }
  0x95   :  { %vm69_vm1 = vcmp.eq.s32.totalorder %v1541_v18, %v1607_v30  ;;  %vm70_vm2 = vcmp.eq.s32.totalorder %v1544_v19, %v1607_v30  ;;  %v1633_v35 = vpop.permute.xlu1 %118  ;;  %v1070_v36 = vsel %vm65_vm13, 1.0, %v1493_v20  ;;  %v1071_v37 = vsel %vm66_vm14, 1.0, %v1493_v20 }
  0x96   :  { %v1074_v38 = vsel %vm69_vm1, 1.0, %v1493_v20  ;;  %v1075_v39 = vsel %vm70_vm2, 1.0, %v1493_v20  ;;  %vm123_vm3 = vcmp.eq.s32.totalorder %v1525_v8, %v1633_v35  ;;  %vm124_vm4 = vcmp.eq.s32.totalorder %v1530_v14, %v1633_v35 }
  0x97   :  { %vm125_vm5 = vcmp.eq.s32.totalorder %v1533_v15, %v1633_v35  ;;  %vm126_vm6 = vcmp.eq.s32.totalorder %v1536_v16, %v1633_v35  ;;  %vm127_vm7 = vcmp.eq.s32.totalorder %v1541_v18, %v1633_v35  ;;  %vm128_vm8 = vcmp.eq.s32.totalorder %v1544_v19, %v1633_v35 }
  0x98   :  { %v1088_v43 = vsel %vm127_vm7, 1.0, %v1493_v20  ;;  %v1089_v44 = vsel %vm128_vm8, 1.0, %v1493_v20  ;;  %v1084_v45 = vsel %vm123_vm3, 1.0, %v1493_v20  ;;  %v1085_v46 = vsel %vm124_vm4, 1.0, %v1493_v20 }
  0x99   :  { %v205_v48 = vadd.f32 %v1088_v43, %v1074_v38  ;;  %v206_v49 = vadd.f32 %v1089_v44, %v1075_v39  ;;  %v201_v50 = vadd.f32 %v1084_v45, %v1070_v36  ;;  %v202_v51 = vadd.f32 %v1085_v46, %v1071_v37  ;;  %v1398_v45 = vld [vmem:[#allocation2 + $0x180] sm:$0xff] }
  0x9a   :  { %v1072_v54 = vsel %vm67_vm15, 1.0, %v1493_v20  ;;  %v1073_v55 = vsel %vm68_vm0, 1.0, %v1493_v20  ;;  %v1086_v56 = vsel %vm125_vm5, 1.0, %v1493_v20  ;;  %v1087_v57 = vsel %vm126_vm6, 1.0, %v1493_v20  ;;  %977 = vmatpush.bf16.msrb.mxu2 %v1398_v45 }
  0x9b   :  { %v1671_v58 = vpop.permute.xlu0 %63  ;;  %v215_v59 = vpack.c.bf16 %v202_v51, %v201_v50  ;;  %v203_v60 = vadd.f32 %v1086_v56, %v1072_v54  ;;  %v204_v61 = vadd.f32 %v1087_v57, %v1073_v55  ;;  %v1673_v63 = vpack.c.bf16 %v206_v49, %v205_v48 }
  0x9c   :  { %vm72_vm9 = vcmp.eq.s32.totalorder %v1525_v8, %v1671_v58  ;;  %vm73_vm10 = vcmp.eq.s32.totalorder %v1530_v14, %v1671_v58  ;;  %vm74_vm11 = vcmp.eq.s32.totalorder %v1533_v15, %v1671_v58  ;;  %vm75_vm12 = vcmp.eq.s32.totalorder %v1536_v16, %v1671_v58 }
  0x9d   :  { %vm76_vm13 = vcmp.eq.s32.totalorder %v1541_v18, %v1671_v58  ;;  %vm77_vm14 = vcmp.eq.s32.totalorder %v1544_v19, %v1671_v58  ;;  %v1687_v1 = vpop.permute.xlu1 %121  ;;  %v1077_v2 = vsel %vm72_vm9, 1.0, %v1493_v20  ;;  %v1078_v3 = vsel %vm73_vm10, 1.0, %v1493_v20 }
  0x9e   :  { %v1081_v5 = vsel %vm76_vm13, 1.0, %v1493_v20  ;;  %v1082_v6 = vsel %vm77_vm14, 1.0, %v1493_v20  ;;  %vm130_vm15 = vcmp.eq.s32.totalorder %v1525_v8, %v1687_v1  ;;  %vm131_vm0 = vcmp.eq.s32.totalorder %v1530_v14, %v1687_v1 }
  0x9f   :  { %vm132_vm1 = vcmp.eq.s32.totalorder %v1533_v15, %v1687_v1  ;;  %vm133_vm2 = vcmp.eq.s32.totalorder %v1536_v16, %v1687_v1  ;;  %vm134_vm3 = vcmp.eq.s32.totalorder %v1541_v18, %v1687_v1  ;;  %vm135_vm4 = vcmp.eq.s32.totalorder %v1544_v19, %v1687_v1 }
  0xa0   :  { %v1095_v9 = vsel %vm134_vm3, 1.0, %v1493_v20  ;;  %v1096_v10 = vsel %vm135_vm4, 1.0, %v1493_v20  ;;  %v1091_v12 = vsel %vm130_vm15, 1.0, %v1493_v20  ;;  %v1092_v13 = vsel %vm131_vm0, 1.0, %v1493_v20 }
  0xa1   :  { %v1709_v36 = vadd.f32 %v1095_v9, %v1081_v5  ;;  %v1711_v37 = vadd.f32 %v1096_v10, %v1082_v6  ;;  %v208_v38 = vadd.f32 %v1091_v12, %v1077_v2  ;;  %v209_v39 = vadd.f32 %v1092_v13, %v1078_v3 }
  0xa2   :  { %v281_v41 = vunpack.c.l.bf16 %v215_v59  ;;  %v282_v42 = vunpack.c.h.bf16 %v215_v59  ;;  %v1079_v43 = vsel %vm74_vm11, 1.0, %v1493_v20  ;;  %v1080_v44 = vsel %vm75_vm12, 1.0, %v1493_v20 }
  0xa3   :  { %v219_v46 = vpack.c.bf16 %v209_v39, %v208_v38  ;;  %v1093_v47 = vsel %vm132_vm1, 1.0, %v1493_v20  ;;  %v1094_v48 = vsel %vm133_vm2, 1.0, %v1493_v20  ;;  %v216_v49 = vpack.c.bf16 %v204_v61, %v203_v60 }
  0xa4   :  { %v1729_v50 = vpop.permute.xlu0 %334  ;;  %v309_v51 = vadd.f32 %v1557_v21, %v281_v41  ;;  %v310_v52 = vadd.f32 %v1575_v22, %v282_v42  ;;  %v210_v53 = vadd.f32 %v1093_v47, %v1079_v43  ;;  %v211_v54 = vadd.f32 %v1094_v48, %v1080_v44 }
  0xa5   :  { %v288_v55 = vunpack.c.l.bf16 %v219_v46  ;;  %v289_v56 = vunpack.c.h.bf16 %v219_v46  ;;  %vm339_vm5 = vcmp.eq.s32.totalorder %v1525_v8, %v1729_v50  ;;  %vm340_vm6 = vcmp.eq.s32.totalorder %v1530_v14, %v1729_v50 }
  0xa6   :  { %v1737_v57 = vpop.permute.xlu1 %337  ;;  %v323_v59 = vpack.c.bf16 %v310_v52, %v309_v51  ;;  %v1112_v60 = vsel %vm339_vm5, 1.0, %v1493_v20  ;;  %v1113_v21 = vsel %vm340_vm6, 1.0, %v1493_v20  ;;  %v220_v22 = vpack.c.bf16 %v211_v54, %v210_v53 }
  0xa7   :  { %v316_v61 = vadd.f32 %v1581_v23, %v288_v55  ;;  %v317_v0 = vadd.f32 %v1596_v26, %v289_v56  ;;  %vm346_vm7 = vcmp.eq.s32.totalorder %v1525_v8, %v1737_v57  ;;  %vm347_vm8 = vcmp.eq.s32.totalorder %v1530_v14, %v1737_v57 }
  0xa8   :  { %v1119_v2 = vsel %vm346_vm7, 1.0, %v1493_v20  ;;  %v389_v3 = vunpack.c.l.bf16 %v323_v59  ;;  %v1120_v4 = vsel %vm347_vm8, 1.0, %v1493_v20  ;;  %v390_v5 = vunpack.c.h.bf16 %v323_v59 }
  0xa9   :  { %v327_v6 = vpack.c.bf16 %v317_v0, %v316_v61  ;;  %v283_v7 = vunpack.c.l.bf16 %v216_v49  ;;  %v284_v9 = vunpack.c.h.bf16 %v216_v49  ;;  %v290_v10 = vunpack.c.l.bf16 %v220_v22 }
  0xaa   :  { %v417_v12 = vadd.f32 %v1112_v60, %v389_v3  ;;  %v418_v23 = vadd.f32 %v1113_v21, %v390_v5  ;;  %v291_v13 = vunpack.c.h.bf16 %v220_v22  ;;  %vm341_vm9 = vcmp.eq.s32.totalorder %v1533_v15, %v1729_v50 }
  0xab   :  { %v396_v8 = vunpack.c.l.bf16 %v327_v6  ;;  %v397_v26 = vunpack.c.h.bf16 %v327_v6  ;;  %v311_v14 = vadd.f32 %v1587_v24, %v283_v7  ;;  %v312_v17 = vadd.f32 %v1593_v25, %v284_v9 }
  0xac   :  { %v318_v38 = vadd.f32 %v1599_v27, %v290_v10  ;;  %v319_v39 = vadd.f32 %v1602_v28, %v291_v13  ;;  %vm348_vm10 = vcmp.eq.s32.totalorder %v1533_v15, %v1737_v57  ;;  %v1114_v40 = vsel %vm341_vm9, 1.0, %v1493_v20 }
  0xad   :  { %v424_v41 = vadd.f32 %v1119_v2, %v396_v8  ;;  %v425_v42 = vadd.f32 %v1120_v4, %v397_v26  ;;  %v324_v43 = vpack.c.bf16 %v312_v17, %v311_v14  ;;  %v1121_v44 = vsel %vm348_vm10, 1.0, %v1493_v20 }
  0xae   :  { %v328_v45 = vpack.c.bf16 %v319_v39, %v318_v38  ;;  %vm342_vm11 = vcmp.eq.s32.totalorder %v1536_v16, %v1729_v50  ;;  %vm349_vm12 = vcmp.eq.s32.totalorder %v1536_v16, %v1737_v57  ;;  %v221_v24 = vpack.c.bf16 %v1711_v37, %v1709_v36 }
  0xaf   :  { %v431_v25 = vpack.c.bf16 %v424_v41, %v417_v12  ;;  %v432_v27 = vpack.c.bf16 %v425_v42, %v418_v23  ;;  %v391_v15 = vunpack.c.l.bf16 %v324_v43  ;;  %v1115_v28 = vsel %vm342_vm11, 1.0, %v1493_v20 }
  0xb0   :  { %v398_v46 = vunpack.c.l.bf16 %v328_v45  ;;  %v1122_v47 = vsel %vm349_vm12, 1.0, %v1493_v20  ;;  %v392_v48 = vunpack.c.h.bf16 %v324_v43  ;;  %v399_v49 = vunpack.c.h.bf16 %v328_v45 }
  0xb1   :  { %894 = vmatmul.bf16.vlgmr.msra.gmra.mxu0 %v431_v25  ;;  %908 = vmatmul.bf16.vlgmr.msra.gmra.mxu1 %v432_v27  ;;  %v419_v51 = vadd.f32 %v1114_v40, %v391_v15  ;;  %v285_v52 = vunpack.c.l.bf16 %v1673_v63  ;;  %v286_v16 = vunpack.c.h.bf16 %v1673_v63  ;;  %v292_v53 = vunpack.c.l.bf16 %v221_v24 }
  0xb2   :  { %v426_v54 = vadd.f32 %v1121_v44, %v398_v46  ;;  %v420_v36 = vadd.f32 %v1115_v28, %v392_v48  ;;  %v427_v37 = vadd.f32 %v1122_v47, %v399_v49  ;;  %v293_v55 = vunpack.c.h.bf16 %v221_v24 }
  0xb3   :  { %v313_v56 = vadd.f32 %v1610_v31, %v285_v52  ;;  %v314_v59 = vadd.f32 %v1613_v32, %v286_v16  ;;  %v320_v60 = vadd.f32 %v1616_v33, %v292_v53  ;;  %vm343_vm13 = vcmp.eq.s32.totalorder %v1541_v18, %v1729_v50 }
  0xb4   :  { %v433_v21 = vpack.c.bf16 %v426_v54, %v419_v51  ;;  %v434_v22 = vpack.c.bf16 %v427_v37, %v420_v36  ;;  %v321_v61 = vadd.f32 %v1619_v34, %v293_v55  ;;  %vm350_vm14 = vcmp.eq.s32.totalorder %v1541_v18, %v1737_v57 }
  0xb5   :  { %v325_v63 = vpack.c.bf16 %v314_v59, %v313_v56  ;;  %vm344_vm15 = vcmp.eq.s32.totalorder %v1544_v19, %v1729_v50  ;;  %vm351_vm0 = vcmp.eq.s32.totalorder %v1544_v19, %v1737_v57  ;;  %vm71_vm1 = vcmp.eq.s32.totalorder %v1605_v29, %v1607_v30 }
  0xb6   :  { %922 = vmatmul.bf16.vlgmr.msra.gmra.mxu2 %v433_v21  ;;  %936 = vmatmul.bf16.vlgmr.msra.gmra.mxu3 %v434_v22  ;;  %v329_v31 = vpack.c.bf16 %v321_v61, %v320_v60  ;;  %v1116_v32 = vsel %vm343_vm13, 1.0, %v1493_v20  ;;  %v1123_v33 = vsel %vm350_vm14, 1.0, %v1493_v20  ;;  %v1117_v34 = vsel %vm344_vm15, 1.0, %v1493_v20 }
  0xb7   :  { %vm78_vm2 = vcmp.eq.s32.totalorder %v1605_v29, %v1671_v58  ;;  %v1124_v0 = vsel %vm351_vm0, 1.0, %v1493_v20  ;;  %v1076_v3 = vsel %vm71_vm1, 1.0, %v1493_v20  ;;  %v393_v4 = vunpack.c.l.bf16 %v325_v63 }
  0xb8   :  { %v400_v18 = vunpack.c.l.bf16 %v329_v31  ;;  %v401_v2 = vunpack.c.h.bf16 %v329_v31  ;;  %v394_v19 = vunpack.c.h.bf16 %v325_v63  ;;  %vm129_vm3 = vcmp.eq.s32.totalorder %v1605_v29, %v1633_v35 }
  0xb9   :  { %vm136_vm4 = vcmp.eq.s32.totalorder %v1605_v29, %v1687_v1  ;;  %v1083_v5 = vsel %vm78_vm2, 1.0, %v1493_v20  ;;  %v1090_v6 = vsel %vm129_vm3, 1.0, %v1493_v20  ;;  %vm237_vm5 = vcmp.eq.s32.totalorder %v1605_v29, %v1523_v62 }
  0xba   :  { %v428_v30 = vadd.f32 %v1123_v33, %v400_v18  ;;  %v1097_v58 = vsel %vm136_vm4, 1.0, %v1493_v20  ;;  %v429_v7 = vadd.f32 %v1124_v0, %v401_v2  ;;  %v207_v9 = vadd.f32 %v1090_v6, %v1076_v3 }
  0xbb   :  { %v214_v10 = vadd.f32 %v1097_v58, %v1083_v5  ;;  %v421_v12 = vadd.f32 %v1116_v32, %v393_v4  ;;  %v422_v23 = vadd.f32 %v1117_v34, %v394_v19  ;;  %vm244_vm6 = vcmp.eq.s32.totalorder %v1605_v29, %v1527_v11 }
  0xbc   :  { %v218_v13 = vpack.c.bf16 %v207_v9, %v207_v9  ;;  %v1104_v1 = vsel %vm237_vm5, 1.0, %v1493_v20  ;;  %v1111_v38 = vsel %vm244_vm6, 1.0, %v1493_v20  ;;  %vm345_vm7 = vcmp.eq.s32.totalorder %v1605_v29, %v1729_v50 }
  0xbd   :  { %v222_v35 = vpack.c.bf16 %v214_v10, %v214_v10  ;;  %v435_v8 = vpack.c.bf16 %v428_v30, %v421_v12  ;;  %v436_v26 = vpack.c.bf16 %v429_v7, %v422_v23  ;;  %vm352_vm8 = vcmp.eq.s32.totalorder %v1605_v29, %v1737_v57 }
  0xbe   :  { %v287_v14 = vunpack.c.l.bf16 %v218_v13  ;;  %v1118_v41 = vsel %vm345_vm7, 1.0, %v1493_v20  ;;  %v1125_v42 = vsel %vm352_vm8, 1.0, %v1493_v20  ;;  %vm1020_vm9 = vcmask 1044480  }
  0xbf   :  { %v294_v17 = vunpack.c.l.bf16 %v222_v35  ;;  %vm1041_vm11 = vcmask 1041409  }
  0xc0   :  { %v315_v62 = vadd.f32 %v1104_v1, %v287_v14 }
  0xc1   :  { %950 = vmatmul.bf16.vlgmr.msrb.gmra.mxu0 %v435_v8  ;;  %964 = vmatmul.bf16.vlgmr.msrb.gmra.mxu1 %v436_v26  ;;  %v322_v39 = vadd.f32 %v1111_v38, %v294_v17 }
  0xc2   :  { %v326_v40 = vpack.c.bf16 %v315_v62, %v315_v62 }
  0xc3   :  { %v330_v11 = vpack.c.bf16 %v322_v39, %v322_v39 }
  0xc4   :  { %v395_v43 = vunpack.c.l.bf16 %v326_v40 }
  0xc5   :  { %v402_v44 = vunpack.c.l.bf16 %v330_v11 }
  0xc6   :  { %v423_v45 = vadd.f32 %v1118_v41, %v395_v43 }
  0xc7   :  { %v430_v24 = vadd.f32 %v1125_v42, %v402_v44  ;;  %v1498_v42 = vmov -1.0  }
  0xc9   :  { %v437_v25 = vpack.c.bf16 %v430_v24, %v423_v45 }
  0xcb   :  { %978 = vmatmul.bf16.vlgmr.msrb.gmra.mxu2 %v437_v25 }
 0x12e   :  { %v895_v50 = vpop.f32.mrf.mxu0  ;;  %v909_v27 = vpop.f32.mrf.mxu1 }
 0x12f   :  { %v910_v47 = vadd.f32 %v909_v27, %v895_v50 }
 0x136   :  { %v897_v28 = vpop.f32.mrf.mxu0  ;;  %v911_v46 = vpop.f32.mrf.mxu1 }
 0x137   :  { %v912_v52 = vadd.f32 %v911_v46, %v897_v28 }
 0x139   :  { %v923_v15 = vpop.f32.mrf.mxu2  ;;  %v937_v29 = vpop.f32.mrf.mxu3 }
 0x13a   :  { %v924_v48 = vadd.f32 %v923_v15, %v910_v47 }
 0x13c   :  { %v938_v51 = vadd.f32 %v937_v29, %v924_v48 }
 0x13e   :  { %v951_v49 = vpop.f32.mrf.mxu0  ;;  %v965_v20 = vpop.f32.mrf.mxu1 }
 0x13f   :  { %v952_v16 = vadd.f32 %v951_v49, %v938_v51 }
 0x141   :  { %v925_v57 = vpop.f32.mrf.mxu2  ;;  %v939_v54 = vpop.f32.mrf.mxu3  ;;  %v966_v36 = vadd.f32 %v965_v20, %v952_v16 }
 0x142   :  { %v926_v53 = vadd.f32 %v925_v57, %v912_v52 }
 0x144   :  { %v940_v56 = vadd.f32 %v939_v54, %v926_v53 }
 0x146   :  { %v953_v55 = vpop.f32.mrf.mxu0  ;;  %v967_v21 = vpop.f32.mrf.mxu1 }
 0x147   :  { %v954_v60 = vadd.f32 %v953_v55, %v940_v56 }
 0x149   :  { %v968_v22 = vadd.f32 %v967_v21, %v954_v60 }
 0x14e   :  { %v979_v37 = vpop.f32.mrf.mxu2 }
 0x14f   :  { %v980_v59 = vadd.f32 %v979_v37, %v966_v36 }
 0x151   :  { %988 = vrot.lane.b32.xlu2 %v980_v59, %s1494_s0  ;;  %v1014_v12 = vrot.slane %v980_v59, 3 }
 0x156   :  { %v981_v61 = vpop.f32.mrf.mxu2 }
 0x157   :  { %v982_v63 = vadd.f32 %v981_v61, %v968_v22 }
 0x159   :  { %984 = vrot.lane.b32.xlu2 %v980_v59, %s1495_s19  ;;  %986 = vrot.lane.b32.xlu0 %v982_v63, %s1495_s19  ;;  %v1015_v19 = vrot.slane %v982_v63, 3 }
 0x15a   :  { %990 = vrot.lane.b32.xlu1 %v982_v63, %s1494_s0 }
 0x161   :  { %1002 = vrot.lane.b32.xlu2 %v982_v63, %s1496_s20 }
 0x162   :  { %1000 = vrot.lane.b32.xlu1 %v980_v59, %s1496_s20 }
 0x1ab   :  { %v989_v31 = vpop.permute.xlu2 %988 }
 0x1ac   :  { %v994_v30 = vrot.slane %v989_v31, 1 }
 0x1b3   :  { %v985_v32 = vpop.permute.xlu2 %984 }
 0x1b4   :  { %v998_v58 = vmul.f32 %v994_v30, %v985_v32 }
 0x1bb   :  { %v1003_v33 = vpop.permute.xlu2 %1002 }
 0x1bc   :  { %v1007_v2 = vrot.slane %v1003_v33, 2 }
 0x1cb   :  { %v987_v0 = vpop.permute.xlu0 %986 }
 0x1cc   :  { %v991_v34 = vpop.permute.xlu1 %990 }
 0x1cd   :  { %v995_v18 = vrot.slane %v991_v34, 1 }
 0x1cf   :  { %v999_v3 = vmul.f32 %v995_v18, %v987_v0 }
 0x1d1   :  { %v1011_v4 = vmul.f32 %v1007_v2, %v999_v3 }
 0x1d3   :  { %v1019_v5 = vmul.f32 %v1015_v19, %v1011_v4 }
 0x1d4   :  { %v1001_v6 = vpop.permute.xlu1 %1000 }
 0x1d5   :  { %v1006_v7 = vrot.slane %v1001_v6, 2  ;;  %v1028_v9 = vsel %vm1020_vm9, %v1019_v5, 0.0 }
 0x1d6   :  { %v1029_v10 = vrot.slane %v1028_v9, 4 }
 0x1d7   :  { %v1010_v23 = vmul.f32 %v1006_v7, %v998_v58 }
 0x1d8   :  { %v1030_v13 = vadd.f32 %v1029_v10, %v1028_v9 }
 0x1d9   :  { %v1018_v35 = vmul.f32 %v1014_v12, %v1010_v23 }
 0x1da   :  { %v1031_v1 = vrot.slane %v1030_v13, 2 }
 0x1db   :  { %v1021_v8 = vsel %vm1020_vm9, %v1018_v35, 0.0 }
 0x1dc   :  { %v1022_v26 = vrot.slane %v1021_v8, 4  ;;  %v1032_v14 = vadd.f32 %v1031_v1, %v1030_v13 }
 0x1de   :  { %v1023_v17 = vadd.f32 %v1022_v26, %v1021_v8  ;;  %v1033_v38 = vrot.slane %v1032_v14, 1 }
 0x1e0   :  { %v1024_v62 = vrot.slane %v1023_v17, 2  ;;  %v1034_v40 = vadd.f32 %v1033_v38, %v1032_v14 }
 0x1e2   :  { %v1025_v39 = vadd.f32 %v1024_v62, %v1023_v17  ;;  %vm1036_vm10 = vcmp.gt.f32.partialorder %v1034_v40, 0.0 }
 0x1e3   :  { %v1038_v44 = vsel %vm1036_vm10, 1.0, %v1498_v42 }
 0x1e4   :  { %v1026_v11 = vrot.slane %v1025_v39, 1 }
 0x1e6   :  { %v1027_v41 = vadd.f32 %v1026_v11, %v1025_v39 }
 0x1e8   :  { %vm1035_vm12 = vcmp.gt.f32.partialorder %v1027_v41, 0.0 }
 0x1e9   :  { %v1037_v43 = vsel %vm1035_vm12, 1.0, %v1498_v42 }
 0x1ea   :  { %v1042_v45 = vsel %vm1041_vm11, %v1038_v44, %v1037_v43 }
 0x1eb   :  { %1044 = vst [vmem:[#allocation5] sm:$0x3] %v1042_v45 }
 0x1ec   :  { %1055 = dma.vmem_to_hbm [thread:$0]  %s1051_s22, 32, %s1053_s25, [#allocation4]  }
 0x1ed   :  { %1483 = dma.done.wait [#allocation4], 32  }
 0x1ee   :  { %1484 = vsyncadd [#allocation4], 4294967264 }
 0x1ef   :  { %1060 = vsyncpa [#allocation3], 1 }
 0x1f0   :  { %1061 = vsyncpa [#allocation4], 1 }

</bundles_post_ra>
